<compile_context>
chip_gen: v7x
topology: tpu7x:2x2x1
jax: 0.10.0
libtpu: 0.0.40
codegen_flags: <defaults>
</compile_context>

<pallas_src>
import jax
import jax.numpy as jnp
from jax import lax
from jax.experimental import pallas as pl
from jax.experimental.pallas import tpu as pltpu


def _layer_norm(h, gamma, beta, eps=1e-5):
    # PyTorch LayerNorm: biased variance, eps inside the sqrt.
    mu = jnp.mean(h, axis=-1, keepdims=True)
    xc = h - mu
    var = jnp.mean(xc * xc, axis=-1, keepdims=True)
    return xc * lax.rsqrt(var + eps) * gamma + beta


def _fused_kernel(x_ref, w0_ref, ph_ref, w2_ref, ph2_ref, o_ref):
    f32 = jnp.float32
    x = x_ref[...]                                                     # (TB, D_in)

    # Packed parameter slabs (constant across the grid, resident in VMEM).
    b0 = ph_ref[0:1, :]                                                # (1, H)
    g1 = ph_ref[1:2, :]
    be1 = ph_ref[2:3, :]
    b2 = ph2_ref[0:1, :]                                               # (1, H2)
    g2 = ph2_ref[1:2, :]
    be2 = ph2_ref[2:3, :]
    w3 = ph2_ref[3:4, :]                                               # (1, H2)
    b3 = ph2_ref[4:5, 0:1]                                             # (1, 1)

    # Composed chain: input_proj -> (seq-len-1 attention == out_proj(v_proj)) -> fc1.
    z = jnp.dot(x, w0_ref[...], preferred_element_type=f32) + b0       # (TB, H)
    z = jnp.maximum(_layer_norm(z, g1, be1), 0.0)                      # LN -> ReLU

    # MLP block 1: Linear(H, H/2) -> LayerNorm -> ReLU   (Dropout: eval no-op)
    z = jnp.dot(z, w2_ref[...], preferred_element_type=f32) + b2       # (TB, H2)
    z = jnp.maximum(_layer_norm(z, g2, be2), 0.0)

    # Final Linear(H/2 -> 1), produced lane-dense: (1,H2) @ (H2,TB) -> (1,TB).
    out = jnp.dot(w3, z.T, preferred_element_type=f32) + b3            # (1, TB)
    o_ref[...] = out.astype(o_ref.dtype)


def _round_up(n, m):
    return ((n + m - 1) // m) * m


def attention_mlp_regressor(x: jax.Array, params: dict, *, tb_max: int = 2048) -> jax.Array:
    """Fused forward of AttentionMLPRegressor (eval semantics). Returns shape [B].

    `params` holds PyTorch-layout tensors:
      w_in [H,D_in], b_in [H]; w_v [H,H], b_v [H]; w_o [H,H], b_o [H];
      w1 [H,H], b1 [H], g1/be1 [H]; w2 [H2,H], b2 [H2], g2/be2 [H2]; w3 [1,H2], b3 [1].
    (q/k projection weights are not needed: seq_len == 1 makes them cancel exactly.)
    """
    B, D_in = x.shape
    H = params["w_in"].shape[0]
    H2 = params["w2"].shape[0]

    hp = lax.Precision.HIGHEST
    mm = lambda a, b: jnp.dot(a, b, precision=hp)

    win_t = params["w_in"].T                       # (D_in, H)
    wv_t = params["w_v"].T                         # (H, H)
    wo_t = params["w_o"].T                         # (H, H)
    w1_t = params["w1"].T                          # (H, H)
    w2_t = params["w2"].T                          # (H, H2)

    # Pre-compose the linear chain x -> input_proj -> v_proj -> out_proj -> fc1.
    # Exact: softmax over one key == 1, dropout is eval, no nonlinearity in between.
    W0 = mm(mm(mm(win_t, wv_t), wo_t), w1_t)                                        # (D_in, H)
    b0 = mm(mm(mm(params["b_in"], wv_t) + params["b_v"], wo_t) + params["b_o"], w1_t) \
        + params["b1"]                                                               # (H,)

    # Pack remaining per-feature vectors into two small slabs (fewer operands).
    slab_h = jnp.stack([b0, params["g1"], params["be1"]], axis=0)                    # (3, H)
    slab_h2 = jnp.concatenate(
        [params["b2"][None, :], params["g2"][None, :], params["be2"][None, :],
         params["w3"].reshape(1, H2),
         jnp.broadcast_to(params["b3"].astype(jnp.float32), (1, H2))],
        axis=0)                                                                      # (5, H2)

    # Batch tile: single full-batch tile for small B; for larger B use >=2 blocks so
    # the "parallel" axis shards across TensorCores (v7x), capped at tb_max (VMEM).
    if B <= 512:
        tb = B
    else:
        tb = min(tb_max, _round_up(pl.cdiv(B, 2), 8))
    num_blocks = pl.cdiv(B, tb)

    out = pl.pallas_call(
        _fused_kernel,
        out_shape=jax.ShapeDtypeStruct((num_blocks, tb), jnp.float32),
        grid_spec=pltpu.PrefetchScalarGridSpec(
            num_scalar_prefetch=0,
            grid=(num_blocks,),
            in_specs=[
                pl.BlockSpec((tb, D_in), lambda i: (i, 0)),    # x tile
                pl.BlockSpec((D_in, H), lambda i: (0, 0)),     # composed weight W0
                pl.BlockSpec((3, H), lambda i: (0, 0)),        # [b0; g1; be1]
                pl.BlockSpec((H, H2), lambda i: (0, 0)),       # w2^T
                pl.BlockSpec((5, H2), lambda i: (0, 0)),       # [b2; g2; be2; w3; b3]
            ],
            out_specs=pl.BlockSpec((1, tb), lambda i: (i, 0)),  # lane-dense output row
        ),
        compiler_params=pltpu.CompilerParams(
            dimension_semantics=("parallel",),                 # shard batch across TCs (v7x)
        ),
    )(x.astype(jnp.float32), W0.astype(jnp.float32), slab_h.astype(jnp.float32),
      w2_t.astype(jnp.float32), slab_h2.astype(jnp.float32))

    return out.reshape(-1)[:B]


def reference_forward(x, params, num_heads):
    """Pure-JAX reference mirroring the PyTorch module (FULL multi-head attention)."""
    hp = lax.Precision.HIGHEST
    mm = lambda a, b: jnp.dot(a, b, precision=hp)

    h = mm(x, params["w_in"].T) + params["b_in"]
    B, H = h.shape
    dh = H // num_heads

    q = (mm(h, params["w_q"].T) + params["b_q"]).reshape(B, num_heads, dh)
    k = (mm(h, params["w_k"].T) + params["b_k"]).reshape(B, num_heads, dh)
    v = (mm(h, params["w_v"].T) + params["b_v"]).reshape(B, num_heads, dh)
    # seq_len == 1: one score per head; softmax over a single key == 1.
    scores = jnp.sum(q * k, axis=-1, keepdims=True) / jnp.sqrt(jnp.float32(dh))
    w = jax.nn.softmax(scores, axis=-1)
    attn = (w * v).reshape(B, H)
    a = mm(attn, params["w_o"].T) + params["b_o"]

    def ln(t, g, b, eps=1e-5):
        mu = t.mean(-1, keepdims=True)
        var = ((t - mu) ** 2).mean(-1, keepdims=True)
        return (t - mu) / jnp.sqrt(var + eps) * g + b

    z = jnp.maximum(ln(mm(a, params["w1"].T) + params["b1"], params["g1"], params["be1"]), 0.0)
    z = jnp.maximum(ln(mm(z, params["w2"].T) + params["b2"], params["g2"], params["be2"]), 0.0)
    return (mm(z, params["w3"].T) + params["b3"])[:, 0]


if __name__ == "__main__":
    key = jax.random.PRNGKey(0)
    B, D_IN, H, NUM_HEADS = 16, 32, 128, 4     # module defaults: hidden=128, heads=4, layers=2
    H2 = H // 2

    keys = jax.random.split(key, 24)
    ki = iter(keys)

    def unif(k, shape, fan_in):
        b = 1.0 / (fan_in ** 0.5)
        return jax.random.uniform(k, shape, minval=-b, maxval=b, dtype=jnp.float32)

    params = {
        "w_in": unif(next(ki), (H, D_IN), D_IN), "b_in": unif(next(ki), (H,), D_IN),
        "w_q": unif(next(ki), (H, H), H), "b_q": unif(next(ki), (H,), H),
        "w_k": unif(next(ki), (H, H), H), "b_k": unif(next(ki), (H,), H),
        "w_v": unif(next(ki), (H, H), H), "b_v": unif(next(ki), (H,), H),
        "w_o": unif(next(ki), (H, H), H), "b_o": unif(next(ki), (H,), H),
        "w1": unif(next(ki), (H, H), H), "b1": unif(next(ki), (H,), H),
        "g1": 1.0 + 0.1 * jax.random.normal(next(ki), (H,), dtype=jnp.float32),
        "be1": 0.1 * jax.random.normal(next(ki), (H,), dtype=jnp.float32),
        "w2": unif(next(ki), (H2, H), H), "b2": unif(next(ki), (H2,), H),
        "g2": 1.0 + 0.1 * jax.random.normal(next(ki), (H2,), dtype=jnp.float32),
        "be2": 0.1 * jax.random.normal(next(ki), (H2,), dtype=jnp.float32),
        "w3": unif(next(ki), (1, H2), H2), "b3": unif(next(ki), (1,), H2),
    }
    x = jax.random.normal(next(ki), (B, D_IN), dtype=jnp.float32)

    y = attention_mlp_regressor(x, params)
    y = jax.block_until_ready(y)

    y_ref = reference_forward(x, params, NUM_HEADS)
    assert y.shape == (B,)
    max_err = float(jnp.max(jnp.abs(y - y_ref)))
    assert jnp.allclose(y, y_ref, atol=2e-3, rtol=2e-3), f"mismatch vs reference (max abs err {max_err})"

    print("KERNEL_OK")
</pallas_src>

<mosaic_0001>
module attributes {stable_mosaic.version = 11 : i64} {
  func.func @_fused_kernel(%arg0: i32, %arg1: memref<16x32xf32, #tpu.memory_space<vmem>>, %arg2: memref<32x128xf32, #tpu.memory_space<vmem>>, %arg3: memref<3x128xf32, #tpu.memory_space<vmem>>, %arg4: memref<128x64xf32, #tpu.memory_space<vmem>>, %arg5: memref<5x64xf32, #tpu.memory_space<vmem>>, %arg6: memref<1x16xf32, #tpu.memory_space<vmem>>) attributes {dimension_semantics = [#tpu.dimension_semantics<parallel>], iteration_bounds = array<i64: 1>, scalar_prefetch = 0 : i64, scratch_operands = 0 : i64, tpu.core_type = #tpu.core_type<tc>, window_params = [{transform_indices = @transform_0, window_bounds = array<i64: 16, 32>}, {pipeline_mode = #tpu.pipeline_mode<synchronous>, transform_indices = @transform_1, window_bounds = array<i64: 32, 128>}, {pipeline_mode = #tpu.pipeline_mode<synchronous>, transform_indices = @transform_2, window_bounds = array<i64: 3, 128>}, {pipeline_mode = #tpu.pipeline_mode<synchronous>, transform_indices = @transform_3, window_bounds = array<i64: 128, 64>}, {pipeline_mode = #tpu.pipeline_mode<synchronous>, transform_indices = @transform_4, window_bounds = array<i64: 5, 64>}, {transform_indices = @transform_5, window_bounds = array<i64: 1, 16>}]} {
    %c0 = arith.constant 0 : index
    %c0_0 = arith.constant 0 : index
    %0 = vector.load %arg1[%c0, %c0_0] : memref<16x32xf32, #tpu.memory_space<vmem>>, vector<16x32xf32>
    %c0_1 = arith.constant 0 : index
    %c0_2 = arith.constant 0 : index
    %1 = vector.load %arg3[%c0_1, %c0_2] : memref<3x128xf32, #tpu.memory_space<vmem>>, vector<1x128xf32>
    %c1 = arith.constant 1 : index
    %c0_3 = arith.constant 0 : index
    %2 = vector.load %arg3[%c1, %c0_3] : memref<3x128xf32, #tpu.memory_space<vmem>>, vector<1x128xf32>
    %c2 = arith.constant 2 : index
    %c0_4 = arith.constant 0 : index
    %3 = vector.load %arg3[%c2, %c0_4] : memref<3x128xf32, #tpu.memory_space<vmem>>, vector<1x128xf32>
    %c0_5 = arith.constant 0 : index
    %c0_6 = arith.constant 0 : index
    %4 = vector.load %arg5[%c0_5, %c0_6] : memref<5x64xf32, #tpu.memory_space<vmem>>, vector<1x64xf32>
    %c1_7 = arith.constant 1 : index
    %c0_8 = arith.constant 0 : index
    %5 = vector.load %arg5[%c1_7, %c0_8] : memref<5x64xf32, #tpu.memory_space<vmem>>, vector<1x64xf32>
    %c2_9 = arith.constant 2 : index
    %c0_10 = arith.constant 0 : index
    %6 = vector.load %arg5[%c2_9, %c0_10] : memref<5x64xf32, #tpu.memory_space<vmem>>, vector<1x64xf32>
    %c3 = arith.constant 3 : index
    %c0_11 = arith.constant 0 : index
    %7 = vector.load %arg5[%c3, %c0_11] : memref<5x64xf32, #tpu.memory_space<vmem>>, vector<1x64xf32>
    %c4 = arith.constant 4 : index
    %c0_12 = arith.constant 0 : index
    %8 = vector.load %arg5[%c4, %c0_12] : memref<5x64xf32, #tpu.memory_space<vmem>>, vector<1x1xf32>
    %c0_13 = arith.constant 0 : index
    %c0_14 = arith.constant 0 : index
    %9 = vector.load %arg2[%c0_13, %c0_14] : memref<32x128xf32, #tpu.memory_space<vmem>>, vector<32x128xf32>
    %cst = arith.constant dense<0.000000e+00> : vector<16x128xf32>
    %10 = tpu.matmul %0, %9, %cst {dimension_numbers = #tpu.dot_dimension_numbers<[1], [0], [0], [1], [0, 0, 1, 1], [], []>} : vector<16x32xf32>, vector<32x128xf32>, vector<16x128xf32> -> vector<16x128xf32>
    %11 = vector.broadcast %1 : vector<1x128xf32> to vector<16x128xf32>
    %12 = arith.addf %10, %11 : vector<16x128xf32>
    %cst_15 = arith.constant dense<0.000000e+00> : vector<16xf32>
    %13 = vector.multi_reduction <add>, %12, %cst_15 [1] : vector<16x128xf32> to vector<16xf32>
    %14 = vector.shape_cast %13 : vector<16xf32> to vector<16x1xf32>
    %cst_16 = arith.constant 1.280000e+02 : f32
    %15 = vector.broadcast %cst_16 : f32 to vector<16x1xf32>
    %16 = arith.divf %14, %15 : vector<16x1xf32>
    %17 = vector.broadcast %16 : vector<16x1xf32> to vector<16x128xf32>
    %18 = arith.subf %12, %17 : vector<16x128xf32>
    %19 = arith.mulf %18, %18 : vector<16x128xf32>
    %cst_17 = arith.constant dense<0.000000e+00> : vector<16xf32>
    %20 = vector.multi_reduction <add>, %19, %cst_17 [1] : vector<16x128xf32> to vector<16xf32>
    %21 = vector.shape_cast %20 : vector<16xf32> to vector<16x1xf32>
    %cst_18 = arith.constant 1.280000e+02 : f32
    %22 = vector.broadcast %cst_18 : f32 to vector<16x1xf32>
    %23 = arith.divf %21, %22 : vector<16x1xf32>
    %cst_19 = arith.constant 9.99999974E-6 : f32
    %24 = vector.broadcast %cst_19 : f32 to vector<16x1xf32>
    %25 = arith.addf %23, %24 : vector<16x1xf32>
    %26 = math.rsqrt %25 : vector<16x1xf32>
    %27 = vector.broadcast %26 : vector<16x1xf32> to vector<16x128xf32>
    %28 = arith.mulf %18, %27 : vector<16x128xf32>
    %29 = vector.broadcast %2 : vector<1x128xf32> to vector<16x128xf32>
    %30 = arith.mulf %28, %29 : vector<16x128xf32>
    %31 = vector.broadcast %3 : vector<1x128xf32> to vector<16x128xf32>
    %32 = arith.addf %30, %31 : vector<16x128xf32>
    %cst_20 = arith.constant 0.000000e+00 : f32
    %33 = vector.broadcast %cst_20 : f32 to vector<16x128xf32>
    %34 = arith.maximumf %32, %33 : vector<16x128xf32>
    %c0_21 = arith.constant 0 : index
    %c0_22 = arith.constant 0 : index
    %35 = vector.load %arg4[%c0_21, %c0_22] : memref<128x64xf32, #tpu.memory_space<vmem>>, vector<128x64xf32>
    %cst_23 = arith.constant dense<0.000000e+00> : vector<16x64xf32>
    %36 = tpu.matmul %34, %35, %cst_23 {dimension_numbers = #tpu.dot_dimension_numbers<[1], [0], [0], [1], [0, 0, 1, 1], [], []>} : vector<16x128xf32>, vector<128x64xf32>, vector<16x64xf32> -> vector<16x64xf32>
    %37 = vector.broadcast %4 : vector<1x64xf32> to vector<16x64xf32>
    %38 = arith.addf %36, %37 : vector<16x64xf32>
    %cst_24 = arith.constant dense<0.000000e+00> : vector<16xf32>
    %39 = vector.multi_reduction <add>, %38, %cst_24 [1] : vector<16x64xf32> to vector<16xf32>
    %40 = vector.shape_cast %39 : vector<16xf32> to vector<16x1xf32>
    %cst_25 = arith.constant 6.400000e+01 : f32
    %41 = vector.broadcast %cst_25 : f32 to vector<16x1xf32>
    %42 = arith.divf %40, %41 : vector<16x1xf32>
    %43 = vector.broadcast %42 : vector<16x1xf32> to vector<16x64xf32>
    %44 = arith.subf %38, %43 : vector<16x64xf32>
    %45 = arith.mulf %44, %44 : vector<16x64xf32>
    %cst_26 = arith.constant dense<0.000000e+00> : vector<16xf32>
    %46 = vector.multi_reduction <add>, %45, %cst_26 [1] : vector<16x64xf32> to vector<16xf32>
    %47 = vector.shape_cast %46 : vector<16xf32> to vector<16x1xf32>
    %cst_27 = arith.constant 6.400000e+01 : f32
    %48 = vector.broadcast %cst_27 : f32 to vector<16x1xf32>
    %49 = arith.divf %47, %48 : vector<16x1xf32>
    %cst_28 = arith.constant 9.99999974E-6 : f32
    %50 = vector.broadcast %cst_28 : f32 to vector<16x1xf32>
    %51 = arith.addf %49, %50 : vector<16x1xf32>
    %52 = math.rsqrt %51 : vector<16x1xf32>
    %53 = vector.broadcast %52 : vector<16x1xf32> to vector<16x64xf32>
    %54 = arith.mulf %44, %53 : vector<16x64xf32>
    %55 = vector.broadcast %5 : vector<1x64xf32> to vector<16x64xf32>
    %56 = arith.mulf %54, %55 : vector<16x64xf32>
    %57 = vector.broadcast %6 : vector<1x64xf32> to vector<16x64xf32>
    %58 = arith.addf %56, %57 : vector<16x64xf32>
    %cst_29 = arith.constant 0.000000e+00 : f32
    %59 = vector.broadcast %cst_29 : f32 to vector<16x64xf32>
    %60 = arith.maximumf %58, %59 : vector<16x64xf32>
    %61 = tpu.transpose %60, [1, 0] : vector<16x64xf32> -> vector<64x16xf32>
    %cst_30 = arith.constant dense<0.000000e+00> : vector<1x16xf32>
    %62 = tpu.matmul %7, %61, %cst_30 {dimension_numbers = #tpu.dot_dimension_numbers<[1], [0], [0], [1], [0, 0, 1, 1], [], []>} : vector<1x64xf32>, vector<64x16xf32>, vector<1x16xf32> -> vector<1x16xf32>
    %63 = vector.broadcast %8 : vector<1x1xf32> to vector<1x16xf32>
    %64 = arith.addf %62, %63 : vector<1x16xf32>
    %c0_31 = arith.constant 0 : index
    %c0_32 = arith.constant 0 : index
    %65 = vector.load %arg6[%c0_31, %c0_32] : memref<1x16xf32, #tpu.memory_space<vmem>>, vector<1x16xf32>
    tpu.vector_store %arg6[%c0_31, %c0_32], %64 {strides = array<i32>} : memref<1x16xf32, #tpu.memory_space<vmem>>, vector<1x16xf32>,
    return
  }
  func.func @transform_0(%arg0: i32) -> (i32, i32) {
    %c0_i32 = arith.constant 0 : i32
    %c0_i32_0 = arith.constant 0 : i32
    return %arg0, %c0_i32 : i32, i32
  }
  func.func @transform_1(%arg0: i32) -> (i32, i32) {
    %c0_i32 = arith.constant 0 : i32
    %c0_i32_0 = arith.constant 0 : i32
    %c0_i32_1 = arith.constant 0 : i32
    return %c0_i32, %c0_i32_0 : i32, i32
  }
  func.func @transform_2(%arg0: i32) -> (i32, i32) {
    %c0_i32 = arith.constant 0 : i32
    %c0_i32_0 = arith.constant 0 : i32
    %c0_i32_1 = arith.constant 0 : i32
    return %c0_i32, %c0_i32_0 : i32, i32
  }
  func.func @transform_3(%arg0: i32) -> (i32, i32) {
    %c0_i32 = arith.constant 0 : i32
    %c0_i32_0 = arith.constant 0 : i32
    %c0_i32_1 = arith.constant 0 : i32
    return %c0_i32, %c0_i32_0 : i32, i32
  }
  func.func @transform_4(%arg0: i32) -> (i32, i32) {
    %c0_i32 = arith.constant 0 : i32
    %c0_i32_0 = arith.constant 0 : i32
    %c0_i32_1 = arith.constant 0 : i32
    return %c0_i32, %c0_i32_0 : i32, i32
  }
  func.func @transform_5(%arg0: i32) -> (i32, i32) {
    %c0_i32 = arith.constant 0 : i32
    %c0_i32_0 = arith.constant 0 : i32
    return %arg0, %c0_i32 : i32, i32
  }
}

</mosaic_0001>

<bundles_post_ra>
// kernel: tpu_custom_call.1
= control target key start
LH: loop header
LB: loop body
LE: loop exit
PB: predicated region body
PF: predicated region fallthrough
CT: control target
= control target key end

     0   :  { %vm39_vm0 = vcmask 261120   ;;  %s712_s0 = inlined_call_operand.vmem [shape: f32[16,32], index: 0, kind: input, shape index: {}]   ;;  %s713_s1 = inlined_call_operand.vmem [shape: f32[32,128], index: 1, kind: input, shape index: {}]   ;;  %s714_s2 = inlined_call_operand.vmem [shape: f32[3,128], index: 2, kind: input, shape index: {}]   ;;  %s715_s3 = inlined_call_operand.vmem [shape: f32[128,64], index: 3, kind: input, shape index: {}]   ;;  %s716_s4 = inlined_call_operand.vmem [shape: f32[5,64], index: 4, kind: input, shape index: {}]   ;;  %s717_s5 = inlined_call_operand.hbm [shape: f32[1,16], index: 5, kind: output, shape index: {}]  }
   0x1   :  { %v31_v0 = vld [vmem:[%s713_s1] sm:$0xff]  ;;  %v32_v1 = vld [vmem:[%s713_s1 + $0x8] sm:$0xff]  ;;  %v33_v2 = vld [vmem:[%s713_s1 + $0x10] sm:$0xff] }
   0x2   :  { %v486_v3 = vpack.c.bf16 %v32_v1, %v31_v0  ;;  %v34_v4 = vld [vmem:[%s713_s1 + $0x18] sm:$0xff]  ;;  %v21_v5 = vld [vmem:[%s712_s0] sm:$0xff] }
   0x3   :  { %v490_v6 = vpack.c.bf16 %v34_v4, %v33_v2  ;;  %441 = vmatprep.mubr.msk.f32.mxu0 %vm39_vm0, %v21_v5 }
   0x4   :  { %10 = vsyncpa [#allocation3], 0  ;;  %487 = vmatprep.subr.bf16.mxu0 %v486_v3  ;;  %v22_v7 = vld [vmem:[%s712_s0 + $0x8] sm:$0xff]  ;;  %v395_v8 = vld [vmem:[%s714_s2] ss:$0 sm:$0xff]  ;;  %vm253_vm1 = vcmask 523264  }
   0x5   :  { %489 = vmatpush3.bf16.msra.mxu0 %v486_v3  ;;  %v158_v13 = vld [vmem:[%s715_s3] sm:$0xff]  ;;  %v159_v14 = vld [vmem:[%s715_s3 + $0x8] sm:$0xff]  ;;  %v160_v15 = vld [vmem:[%s715_s3 + $0x10] sm:$0xff]  ;;  %vm569_vm2 = vmmov 0   ;;  %s572_s22 = smov [#allocation2]   ;;  %vm379_vm4 = vcmask 122880  }
   0x6   :  { %491 = vmatprep.subr.bf16.mxu0 %v490_v6  ;;  %v494_v16 = vpack.c.bf16 %v159_v14, %v158_v13  ;;  %v161_v17 = vld [vmem:[%s715_s3 + $0x18] sm:$0xff]  ;;  %v162_v27 = vld [vmem:[%s715_s3 + $0x20] sm:$0xff]  ;;  %v163_v28 = vld [vmem:[%s715_s3 + $0x28] sm:$0xff]  ;;  %s387_s23 = sshll.u32 %s572_s22, 4  ;;  %s388_s23 = int_to_ptr.vmem [resolvable:$true] %s387_s23 }
   0x7   :  { %v498_v18 = vpack.c.bf16 %v161_v17, %v160_v15  ;;  %v502_v29 = vpack.c.bf16 %v163_v28, %v162_v27  ;;  %v164_v30 = vld [vmem:[%s715_s3 + $0x30] sm:$0xff]  ;;  %v165_v31 = vld [vmem:[%s715_s3 + $0x38] sm:$0xff]  ;;  %v166_v33 = vld [vmem:[%s715_s3 + $0x40] sm:$0xff]  ;;  %v570_v17 = vmov 0.0   ;;  %s544_s24 = scalar_lea.vmem %s388_s23, 16  ;;  %s548_s25 = scalar_lea.vmem %s388_s23, 32 }
   0x8   :  { %495 = vmatprep.subr.bf16.mxu1 %v494_v16  ;;  %v506_v32 = vpack.c.bf16 %v165_v31, %v164_v30  ;;  %v167_v34 = vld [vmem:[%s715_s3 + $0x48] sm:$0xff]  ;;  %v168_v35 = vld [vmem:[%s715_s3 + $0x50] sm:$0xff]  ;;  %v169_v37 = vld [vmem:[%s715_s3 + $0x58] sm:$0xff]  ;;  %p545_p0 = scmp.ne.s32.totalorder %s388_s23, %s544_s24  ;;  %p549_p1 = scmp.lt.s32.totalorder %s388_s23, %s388_s23 }
   0x9   :  { %493 = vmatpush3.bf16.msra.mxu0 %v490_v6  ;;  %497 = vmatpush3.bf16.msra.mxu1 %v494_v16  ;;  %v510_v36 = vpack.c.bf16 %v167_v34, %v166_v33  ;;  %v514_v38 = vpack.c.bf16 %v169_v37, %v168_v35  ;;  %v170_v39 = vld [vmem:[%s715_s3 + $0x60] sm:$0xff]  ;;  %v171_v40 = vld [vmem:[%s715_s3 + $0x68] sm:$0xff]  ;;  %v172_v42 = vld [vmem:[%s715_s3 + $0x70] sm:$0xff]  ;;  %v568_v16 = vmov 0.0|0.0   ;;  %p550_p2 = scmp.lt.s32.totalorder %s548_s25, %s544_s24 }
   0xa   :  { %499 = vmatprep.subr.bf16.mxu1 %v498_v18  ;;  %v518_v41 = vpack.c.bf16 %v171_v40, %v170_v39  ;;  %v173_v43 = vld [vmem:[%s715_s3 + $0x78] sm:$0xff]  ;;  %v398_v52 = vld [vmem:[%s714_s2 + $0x1] ss:$0 sm:$0xff]  ;;  %v399_v54 = vld [vmem:[%s714_s2 + $0x2] ss:$0 sm:$0xff]  ;;  %526 = vmatprep.subr.bf16.mxu0 %v568_v16 }
   0xb   :  { %v522_v44 = vpack.c.bf16 %v173_v43, %v172_v42  ;;  %v400_v63 = vld [vmem:[%s716_s4] ss:$0 sm:$0xff]  ;;  %v401_v27 = vld [vmem:[%s716_s4 + $0x1] ss:$0 sm:$0xff]  ;;  %v402_v31 = vld [vmem:[%s716_s4 + $0x2] ss:$0 sm:$0xff]  ;;  %p551_p3 = por %p550_p2, %p549_p1 }
   0xc   :  { %442 = vmatmul.mubr.msk.f32.vlgmr.msra.gmra.mrb[0].mxu0 %vm39_vm0, %v22_v7  ;;  %vm528_vm3 = vmpackc.low %vm253_vm1, %vm253_vm1  ;;  %v29_v39 = vld [vmem:[%s716_s4 + $0x3] sm:$0x1] }
   0xd   :  { %501 = vmatpush3.bf16.msra.mxu1 %v498_v18  ;;  %483 = vmatprep.mubr.msk.f32.mxu0 %vm569_vm2, %v570_v17  ;;  %v30_v18 = vld [vmem:[%s716_s4 + $0x4] sm:$0x1]  ;;  %p552_p4 = pnand %p551_p3, %p545_p0 }
   0xe   :  { %503 = vmatprep.subr.bf16.mxu1 %v502_v29 }
  0x11   :  { %505 = vmatpush3.bf16.msra.mxu1 %v502_v29 }
  0x12   :  { %507 = vmatprep.subr.bf16.mxu1 %v506_v32 }
  0x15   :  { %509 = vmatpush3.bf16.msra.mxu1 %v506_v32 }
  0x16   :  { %511 = vmatprep.subr.bf16.mxu1 %v510_v36 }
  0x19   :  { %513 = vmatpush3.bf16.msra.mxu1 %v510_v36 }
  0x1a   :  { %515 = vmatprep.subr.bf16.mxu1 %v514_v38 }
  0x1d   :  { %517 = vmatpush3.bf16.msra.mxu1 %v514_v38 }
  0x1e   :  { %519 = vmatprep.subr.bf16.mxu1 %v518_v41 }
  0x21   :  { %521 = vmatpush3.bf16.msra.mxu1 %v518_v41 }
  0x22   :  { %523 = vmatprep.subr.bf16.mxu1 %v522_v44 }
  0x25   :  { %525 = vmatpush3.bf16.msra.mxu1 %v522_v44 }
  0xdf   :  { %v443_v9 = vpop.f32.mrb[0].mxu0 }
  0xe0   :  { %v112_v10 = vpop.f32.mrb[1].mxu0  ;;  %v118_v12 = vadd.f32 %v443_v9, %v395_v8 }
  0xe1   :  { %v113_v11 = vadd.f32 %v395_v8, %v112_v10 }
  0xe3   :  { %121 = vadd.xlane.f32.xlu0 %v113_v11 }
  0xe7   :  { %123 = vadd.xlane.f32.xlu0 %v118_v12 }
 0x170   :  { %v122_v19 = vpop.xlane.xlu0 %121 }
 0x171   :  { %v126_v20 = vmul.f32 0.0078125, %v122_v19  ;;  %v571_v19 = vmov 0  }
 0x172   :  { %535 = vset.pattern.permute.xlu0 %v571_v19 }
 0x173   :  { %v128_v21 = vsub.f32 %v113_v11, %v126_v20 }
 0x174   :  { %v124_v22 = vpop.xlane.xlu0 %123 }
 0x175   :  { %v127_v23 = vmul.f32 0.0078125, %v124_v22  ;;  %v130_v24 = vmul.f32 %v128_v21, %v128_v21 }
 0x177   :  { %v129_v25 = vsub.f32 %v118_v12, %v127_v23  ;;  %132 = vadd.xlane.f32.xlu1 %v130_v24 }
 0x179   :  { %v131_v26 = vmul.f32 %v129_v25, %v129_v25 }
 0x17b   :  { %134 = vadd.xlane.f32.xlu1 %v131_v26 }
 0x204   :  { %v133_v45 = vpop.xlane.xlu1 %132 }
 0x205   :  { %v136_v46 = vmul.f32 0.0078125, %v133_v45 }
 0x207   :  { %v138_v47 = vadd.f32 1e-05, %v136_v46 }
 0x208   :  { %v135_v48 = vpop.xlane.xlu1 %134 }
 0x209   :  { %536 = vrsqrt.f32 %v138_v47  ;;  %v137_v49 = vmul.f32 0.0078125, %v135_v48 }
 0x20b   :  { %v139_v50 = vadd.f32 1e-05, %v137_v49 }
 0x20d   :  { %538 = vrsqrt.f32 %v139_v50 }
 0x213   :  { %v537_v51 = vpop.eup %536 }
 0x214   :  { %v142_v53 = vmul.f32 %v537_v51, %v128_v21 }
 0x216   :  { %v148_v55 = vmul.f32 %v398_v52, %v142_v53 }
 0x217   :  { %v539_v56 = vpop.eup %538 }
 0x218   :  { %v143_v57 = vmul.f32 %v539_v56, %v129_v25  ;;  %v154_v58 = vadd.f32 %v399_v54, %v148_v55 }
 0x21a   :  { %v149_v59 = vmul.f32 %v398_v52, %v143_v57  ;;  %v156_v60 = vmax.f32 %v154_v58, 0.0 }
 0x21c   :  { %v155_v61 = vadd.f32 %v399_v54, %v149_v59  ;;  %476 = vmatprep.mubr.f32.mxu1 %v156_v60 }
 0x21e   :  { %v157_v62 = vmax.f32 %v155_v61, 0.0 }
 0x220   :  { %477 = vmatmul.mubr.f32.vlgmr.msra.gmra.mrb[0].mxu1 %v157_v62 }
 0x2f3   :  { %v478_v0 = vpop.f32.mrb[0].mxu1 }
 0x2f4   :  { %v250_v1 = vadd.f32 %v478_v0, %v400_v63  ;;  %v244_v2 = vpop.f32.mrb[1].mxu1 }
 0x2f5   :  { %v245_v3 = vadd.f32 %v400_v63, %v244_v2 }
 0x2f6   :  { %v257_v4 = vsel %vm253_vm1, %v250_v1, 0.0 }
 0x2f7   :  { %258 = vadd.xlane.f32.xlu1 %v257_v4  ;;  %v254_v5 = vsel %vm253_vm1, %v245_v3, 0.0 }
 0x2f8   :  { %255 = vadd.xlane.f32.xlu0 %v254_v5 }
 0x384   :  { %v259_v6 = vpop.xlane.xlu1 %258 }
 0x385   :  { %v262_v7 = vmul.f32 0.015625, %v259_v6  ;;  %v256_v8 = vpop.xlane.xlu0 %255 }
 0x386   :  { %v261_v9 = vmul.f32 0.015625, %v256_v8 }
 0x387   :  { %v264_v10 = vsub.f32 %v250_v1, %v262_v7 }
 0x388   :  { %v263_v11 = vsub.f32 %v245_v3, %v261_v9 }
 0x389   :  { %v266_v12 = vmul.f32 %v264_v10, %v264_v10 }
 0x38a   :  { %v265_v13 = vmul.f32 %v263_v11, %v263_v11 }
 0x38b   :  { %v270_v14 = vsel %vm253_vm1, %v266_v12, 0.0 }
 0x38c   :  { %271 = vadd.xlane.f32.xlu1 %v270_v14  ;;  %v267_v15 = vsel %vm253_vm1, %v265_v13, 0.0 }
 0x38d   :  { %268 = vadd.xlane.f32.xlu0 %v267_v15 }
 0x3a3   :  { %297 = vperm.xlu0 %535, %v30_v18  }
 0x419   :  { %v272_v20 = vpop.xlane.xlu1 %271 }
 0x41a   :  { %v274_v21 = vmul.f32 0.015625, %v272_v20  ;;  %v269_v22 = vpop.xlane.xlu0 %268 }
 0x41b   :  { %v273_v23 = vmul.f32 0.015625, %v269_v22 }
 0x41c   :  { %v276_v24 = vadd.f32 1e-05, %v274_v21 }
 0x41d   :  { %v275_v25 = vadd.f32 1e-05, %v273_v23 }
 0x41e   :  { %540 = vrsqrt.f32 %v276_v24 }
 0x41f   :  { %542 = vrsqrt.f32 %v275_v25 }
 0x422   :  { %v298_v40 = vpop.permute.xlu0 %297 }
 0x428   :  { %v541_v26 = vpop.eup %540 }
 0x429   :  { %v543_v28 = vpop.eup %542  ;;  %v280_v29 = vmul.f32 %v541_v26, %v264_v10 }
 0x42a   :  { %v279_v30 = vmul.f32 %v543_v28, %v263_v11 }
 0x42b   :  { %v286_v32 = vmul.f32 %v401_v27, %v280_v29 }
 0x42c   :  { %v285_v33 = vmul.f32 %v401_v27, %v279_v30 }
 0x42d   :  { %v292_v34 = vadd.f32 %v402_v31, %v286_v32 }
 0x42e   :  { %v291_v35 = vadd.f32 %v402_v31, %v285_v33 }
 0x42f   :  { %v294_v36 = vmax.f32 %v292_v34, 0.0 }
 0x430   :  { %v293_v37 = vmax.f32 %v291_v35, 0.0 }
 0x432   :  { %v527_v38 = vpack.c.bf16 %v294_v36, %v293_v37 }
 0x434   :  { %529 = vmatpush3.bf16.xpose.msk.msra.mxu0 %vm528_vm3, %v527_v38 }
 0x43b   :  { %484 = vmatmul.mubr.msk.f32.vlgmr.msra.gmra.mrb[2].mxu0 %vm253_vm1, %v29_v39 }
 0x50e   :  { %v375_v41 = vpop.f32.mrb[2].mxu0 }
 0x50f   :  { %v376_v42 = vadd.f32 %v375_v41, %v298_v40  ;;  %v485_v43 = vpop.f32.mrb[3].mxu0 }
 0x511   :  { %380 = vst.msk [vmem:[#allocation2] sm:$0x1] %vm379_vm4, %v376_v42 }
 0x512   :  { %555 = shalt.err (!%p552_p4)
}
 0x513   :  { %s556_s27 = scalar_lea.hbm %s717_s5, 16 }
 0x514   :  { %p557_p5 = scmp.ne.s32.totalorder %s717_s5, %s556_s27  ;;  %p560_p6 = scmp.lt.u32.totalorder %s556_s27, %s717_s5 }
 0x516   :  { %p562_p7 = pnand %p560_p6, %p557_p5 }
 0x518   :  { %565 = shalt.err (!%p562_p7)
}
 0x519   :  { %390 = dma.vmem_to_hbm [thread:$0]  %s388_s23, 16, %s717_s5, [#allocation3]  }
 0x51a   :  { %566 = dma.done.wait [#allocation3], 16  }
 0x51b   :  { %567 = vsyncadd [#allocation3], 4294967280 }
 0x51c   :  { %394 = vsyncpa [#allocation3], 1 }

</bundles_post_ra>
